<compile_context>
chip_gen: v5e
topology: v5e:2x2
jax: 0.10.0
libtpu: 0.0.40
codegen_flags: <defaults>
</compile_context>

<pallas_src>
import jax
import jax.numpy as jnp
from jax.experimental import pallas as pl
from jax.experimental.pallas import tpu as pltpu


def attn_pool_kernel(x_ref, wk_t_ref, wo_ref, o_ref):
    # x_ref:    (Bt, S, F)  block of Bt batch elements
    # wk_t_ref: (F, F)      == Wk^T (resident across grid steps)
    # wo_ref:   (1, F)      lane-dense o_dense weight row
    # o_ref:    (Bt, F)     lane-dense pooled output slab
    bt, s_len, f = x_ref.shape

    x = x_ref[...]                                                 # (Bt, S, F)
    # One big MXU matmul with M = Bt*S rows (instead of Bt tiny M=S matmuls).
    x2 = x.reshape(bt * s_len, f)                                  # (Bt*S, F)
    h = jnp.tanh(jnp.dot(x2, wk_t_ref[...],
                         preferred_element_type=jnp.float32))      # (Bt*S, F) f32
    h3 = h.reshape(bt, s_len, f)                                   # (Bt, S, F)

    # o_dense as VPU multiply + lane reduction (no 1-lane-wide MXU matmul).
    wo = wo_ref[...].astype(jnp.float32)                           # (1, F)
    scores = jnp.sum(h3 * wo, axis=-1, keepdims=True)              # (Bt, S, 1)

    # Softmax over the sequence axis (axis 1), numerically stable, all f32.
    scores = scores - jnp.max(scores, axis=1, keepdims=True)
    e = jnp.exp(scores)                                            # (Bt, S, 1)
    attn = e / jnp.sum(e, axis=1, keepdims=True)                   # (Bt, S, 1)

    # Attention-weighted sum over the sequence axis -> lane-dense (Bt, F).
    pooled = jnp.sum(attn * x.astype(jnp.float32), axis=1)         # (Bt, F)
    o_ref[...] = pooled.astype(o_ref.dtype)


def _choose_batch_tile(B, S, F, itemsize):
    """Pick Bt so that M = Bt*S is large enough to amortize per-step overhead
    while keeping the x tile within a modest VMEM budget (double-buffered)."""
    if B <= 8:
        return B
    target_rows = 1024                      # aim M = Bt*S ~ 1024 (MXU/DMA friendly)
    x_tile_budget = 4 << 20                 # ~4 MiB per x buffer (x2 double-buffer)
    bt = max(1, target_rows // max(S, 1))
    bt = min(bt, max(1, x_tile_budget // max(S * F * itemsize, 1)))
    bt = min(bt, B)
    # Keep the (Bt, F) output block sublane-aligned (8-row granularity).
    bt = max(8, (bt // 8) * 8)
    return min(bt, B)


def attention_pooling_1d(x, wk, wo, *, batch_tile=None):
    """x: (B, S, F); wk: (F, F) == nn.Linear(F,F).weight; wo: (1, F) == nn.Linear(F,1).weight."""
    B, S, F = x.shape
    wk_t = jnp.asarray(wk).T                                       # (F, F) == Wk^T
    wo_row = jnp.asarray(wo).reshape(1, F)                         # (1, F) lane-dense

    itemsize = jnp.dtype(x.dtype).itemsize
    Bt = batch_tile if batch_tile is not None else _choose_batch_tile(B, S, F, itemsize)
    grid = (pl.cdiv(B, Bt),)

    out = pl.pallas_call(
        attn_pool_kernel,
        out_shape=jax.ShapeDtypeStruct((B, F), x.dtype),
        grid_spec=pltpu.PrefetchScalarGridSpec(
            num_scalar_prefetch=0,
            grid=grid,
            in_specs=[
                pl.BlockSpec((Bt, S, F), lambda b: (b, 0, 0)),      # batched x tile
                pl.BlockSpec((F, F), lambda b: (0, 0)),             # resident Wk^T
                pl.BlockSpec((1, F), lambda b: (0, 0)),             # resident wo row
            ],
            out_specs=pl.BlockSpec((Bt, F), lambda b: (b, 0)),      # lane-dense slab
        ),
        compiler_params=pltpu.CompilerParams(
            dimension_semantics=("parallel",),       # shards batch blocks on v7x's 2 TCs
            vmem_limit_bytes=48 * 1024 * 1024,       # explicit, safe on v7x's 64 MiB VMEM
        ),
    )(x, wk_t, wo_row)
    return out                                                     # (B, F)


if __name__ == "__main__":
    # Small shapes consistent with the module: batch=2, seq=8, num_filters=32.
    B, S, F = 2, 8, 32
    key = jax.random.PRNGKey(0)
    kx, kk, ko = jax.random.split(key, 3)

    x = jax.random.normal(kx, (B, S, F), dtype=jnp.float32)
    # Deterministic synthetic weights (shapes from nn.Linear in __init__):
    #   k_dense.weight: (F, F), o_dense.weight: (1, F)
    wk = jax.random.normal(kk, (F, F), dtype=jnp.float32) * 0.1
    wo = jax.random.normal(ko, (1, F), dtype=jnp.float32) * 0.1

    out = jax.block_until_ready(attention_pooling_1d(x, wk, wo))

    # Pure-JAX reference of the PyTorch forward pass.
    h = jnp.tanh(x @ wk.T)
    scores = h @ wo.T
    attn = jax.nn.softmax(scores, axis=1)
    ref = jnp.sum(attn * x, axis=1)

    assert out.shape == (B, F)
    assert jnp.allclose(out, ref, atol=1e-5, rtol=1e-5), "mismatch vs reference"
    print("KERNEL_OK")
</pallas_src>

<mosaic_0001>
module attributes {stable_mosaic.version = 11 : i64} {
  func.func @attn_pool_kernel(%arg0: i32, %arg1: memref<2x8x32xf32, #tpu.memory_space<vmem>>, %arg2: memref<32x32xf32, #tpu.memory_space<vmem>>, %arg3: memref<1x32xf32, #tpu.memory_space<vmem>>, %arg4: memref<2x32xf32, #tpu.memory_space<vmem>>) attributes {dimension_semantics = [#tpu.dimension_semantics<parallel>], iteration_bounds = array<i64: 1>, scalar_prefetch = 0 : i64, scratch_operands = 0 : i64, tpu.core_type = #tpu.core_type<tc>, window_params = [{transform_indices = @transform_0, window_bounds = array<i64: 2, 8, 32>}, {pipeline_mode = #tpu.pipeline_mode<synchronous>, transform_indices = @transform_1, window_bounds = array<i64: 32, 32>}, {pipeline_mode = #tpu.pipeline_mode<synchronous>, transform_indices = @transform_2, window_bounds = array<i64: 1, 32>}, {transform_indices = @transform_3, window_bounds = array<i64: 2, 32>}]} {
    %c0 = arith.constant 0 : index
    %c0_0 = arith.constant 0 : index
    %c0_1 = arith.constant 0 : index
    %0 = vector.load %arg1[%c0, %c0_0, %c0_1] : memref<2x8x32xf32, #tpu.memory_space<vmem>>, vector<2x8x32xf32>
    %1 = vector.shape_cast %0 : vector<2x8x32xf32> to vector<16x32xf32>
    %c0_2 = arith.constant 0 : index
    %c0_3 = arith.constant 0 : index
    %2 = vector.load %arg2[%c0_2, %c0_3] : memref<32x32xf32, #tpu.memory_space<vmem>>, vector<32x32xf32>
    %cst = arith.constant dense<0.000000e+00> : vector<16x32xf32>
    %3 = tpu.matmul %1, %2, %cst {dimension_numbers = #tpu.dot_dimension_numbers<[1], [0], [0], [1], [0, 0, 1, 1], [], []>} : vector<16x32xf32>, vector<32x32xf32>, vector<16x32xf32> -> vector<16x32xf32>
    %4 = math.tanh %3 : vector<16x32xf32>
    %5 = vector.shape_cast %4 : vector<16x32xf32> to vector<2x8x32xf32>
    %c0_4 = arith.constant 0 : index
    %c0_5 = arith.constant 0 : index
    %6 = vector.load %arg3[%c0_4, %c0_5] : memref<1x32xf32, #tpu.memory_space<vmem>>, vector<1x32xf32>
    %7 = vector.shape_cast %6 : vector<1x32xf32> to vector<1x1x32xf32>
    %8 = vector.broadcast %7 : vector<1x1x32xf32> to vector<2x8x32xf32>
    %9 = arith.mulf %5, %8 : vector<2x8x32xf32>
    %cst_6 = arith.constant dense<0.000000e+00> : vector<2x8xf32>
    %10 = vector.multi_reduction <add>, %9, %cst_6 [2] : vector<2x8x32xf32> to vector<2x8xf32>
    %11 = vector.shape_cast %10 : vector<2x8xf32> to vector<2x8x1xf32>
    %cst_7 = arith.constant dense<0xFF800000> : vector<2x1xf32>
    %12 = vector.multi_reduction <maximumf>, %11, %cst_7 [1] : vector<2x8x1xf32> to vector<2x1xf32>
    %13 = vector.shape_cast %12 : vector<2x1xf32> to vector<2x1x1xf32>
    %14 = vector.broadcast %13 : vector<2x1x1xf32> to vector<2x8x1xf32>
    %15 = arith.subf %11, %14 : vector<2x8x1xf32>
    %16 = math.exp %15 : vector<2x8x1xf32>
    %cst_8 = arith.constant dense<0.000000e+00> : vector<2x1xf32>
    %17 = vector.multi_reduction <add>, %16, %cst_8 [1] : vector<2x8x1xf32> to vector<2x1xf32>
    %18 = vector.shape_cast %17 : vector<2x1xf32> to vector<2x1x1xf32>
    %19 = vector.broadcast %18 : vector<2x1x1xf32> to vector<2x8x1xf32>
    %20 = arith.divf %16, %19 : vector<2x8x1xf32>
    %21 = vector.broadcast %20 : vector<2x8x1xf32> to vector<2x8x32xf32>
    %22 = arith.mulf %21, %0 : vector<2x8x32xf32>
    %cst_9 = arith.constant dense<0.000000e+00> : vector<2x32xf32>
    %23 = vector.multi_reduction <add>, %22, %cst_9 [1] : vector<2x8x32xf32> to vector<2x32xf32>
    %c0_10 = arith.constant 0 : index
    %c0_11 = arith.constant 0 : index
    %24 = vector.load %arg4[%c0_10, %c0_11] : memref<2x32xf32, #tpu.memory_space<vmem>>, vector<2x32xf32>
    tpu.vector_store %arg4[%c0_10, %c0_11], %23 {strides = array<i32>} : memref<2x32xf32, #tpu.memory_space<vmem>>, vector<2x32xf32>,
    return
  }
  func.func @transform_0(%arg0: i32) -> (i32, i32, i32) {
    %c0_i32 = arith.constant 0 : i32
    %c0_i32_0 = arith.constant 0 : i32
    %c0_i32_1 = arith.constant 0 : i32
    return %arg0, %c0_i32, %c0_i32_0 : i32, i32, i32
  }
  func.func @transform_1(%arg0: i32) -> (i32, i32) {
    %c0_i32 = arith.constant 0 : i32
    %c0_i32_0 = arith.constant 0 : i32
    %c0_i32_1 = arith.constant 0 : i32
    return %c0_i32, %c0_i32_0 : i32, i32
  }
  func.func @transform_2(%arg0: i32) -> (i32, i32) {
    %c0_i32 = arith.constant 0 : i32
    %c0_i32_0 = arith.constant 0 : i32
    %c0_i32_1 = arith.constant 0 : i32
    return %c0_i32, %c0_i32_0 : i32, i32
  }
  func.func @transform_3(%arg0: i32) -> (i32, i32) {
    %c0_i32 = arith.constant 0 : i32
    %c0_i32_0 = arith.constant 0 : i32
    return %arg0, %c0_i32 : i32, i32
  }
}

</mosaic_0001>

<bundles_post_ra>
// kernel: tpu_custom_call.1
= control target key start
LH: loop header
LB: loop body
LE: loop exit
PB: predicated region body
PF: predicated region fallthrough
CT: control target
= control target key end

     0   :  { %8 = vsyncpa [#allocation3], 0  ;;  %s351_s0 = inlined_call_operand.hbm [shape: f32[2,8,32], index: 0, kind: input, shape index: {}]   ;;  %s352_s1 = inlined_call_operand.hbm [shape: f32[32,32], index: 1, kind: input, shape index: {}]   ;;  %s353_s2 = inlined_call_operand.vmem [shape: f32[1,32], index: 2, kind: input, shape index: {}]   ;;  %s354_s3 = inlined_call_operand.hbm [shape: f32[2,32], index: 3, kind: output, shape index: {}]  }
   0x1   :  { %9 = vsyncpa [#allocation6], 0 }
   0x2   :  { %10 = vsyncpa [#allocation4], 0  ;;  %s15_s14 = sshll.u32 %s351_s0, 4  ;;  %s300_s15 = smov [#allocation2]   ;;  %s16_s14 = int_to_ptr.hbm [resolvable:$true] %s15_s14 }
   0x3   :  { %s17_s16 = sshll.u32 %s300_s15, 4  ;;  %s28_s19 = sshll.u32 %s352_s1, 4  ;;  %s18_s16 = int_to_ptr.vmem [resolvable:$true] %s17_s16  ;;  %s29_s19 = int_to_ptr.hbm [resolvable:$true] %s28_s19 }
   0x4   :  { %s301_s20 = smov 128   ;;  %s302_s21 = smov 8  }
   0x5   :  { %23 = dma.hbm_to_vmem [thread:$0]  %s16_s14, 256, %s18_s16, [#allocation3], %s301_s20, %s301_s20, %s302_s21  }
   0x6   :  { %s303_s22 = smov [#allocation5]  }
   0x7   :  { %s30_s23 = sshll.u32 %s303_s22, 4  ;;  %s31_s23 = int_to_ptr.vmem [resolvable:$true] %s30_s23 }
   0x8   :  { %36 = dma.hbm_to_vmem [thread:$0]  %s29_s19, 512, %s31_s23, [#allocation6], %s301_s20, %s301_s20, %s302_s21  }
   0x9   :  { %294 = dma.done.wait [#allocation3], 256  }
   0xa   :  { %295 = vsyncadd [#allocation3], 4294967040 }
   0xb   :  { %296 = dma.done.wait [#allocation6], 512  }
   0xc   :  { %297 = vsyncadd [#allocation6], 4294966784  ;;  %v52_v0 = vld [vmem:[#allocation5 + $0x18] sm:$0xff]  ;;  %v51_v1 = vld [vmem:[#allocation5 + $0x10] sm:$0xff]  ;;  %vm53_vm0 = vcmask 261120   ;;  %s187_s27 = sshll.u32 %s354_s3, 4  ;;  %s188_s27 = int_to_ptr.hbm [resolvable:$true] %s187_s27 }
   0xd   :  { %72 = vmatpush.msra.mxu0 %v52_v0  ;;  %200 = vmatpush.msra.mxu1 %v52_v0  ;;  %v50_v2 = vld [vmem:[#allocation5 + $0x8] sm:$0xff]  ;;  %v49_v3 = vld [vmem:[#allocation5] sm:$0xff]  ;;  %v331_v4 = vld [vmem:[#allocation2] sm:$0xff]  ;;  %vm175_vm9 = vcmask 1041409   ;;  %vm178_vm10 = vcmask 254976  }
   0xe   :  { %v333_v5 = vld [vmem:[#allocation2 + $0x8] sm:$0xff]  ;;  %v209_v8 = vld [vmem:[%s353_s2] ss:$0 sm:$0xff]  ;;  %s304_s2 = smov [#allocation7]  }
   0xf   :  { %73 = vmatpush.msra.mxu0 %v51_v1  ;;  %201 = vmatpush.msra.mxu1 %v51_v1  ;;  %s185_s24 = sshll.u32 %s304_s2, 4  ;;  %s186_s24 = int_to_ptr.vmem [resolvable:$true] %s185_s24 }
  0x11   :  { %74 = vmatpush.msra.mxu0 %v50_v2  ;;  %202 = vmatpush.msra.mxu1 %v50_v2 }
  0x13   :  { %75 = vmatpush.msra.mxu0 %v49_v3  ;;  %203 = vmatpush.msra.mxu1 %v49_v3 }
  0x14   :  { %198 = vmatmul.msk.f32.vlgmr.msra.gmra.mxu0 %vm53_vm0, %v331_v4  ;;  %199 = vmatmul.msk.f32.vlgmr.msra.gmra.mxu1 %vm53_vm0, %v333_v5 }
  0x91   :  { %v77_v6 = vpop.f32.mrf.mxu0  ;;  %v80_v7 = vpop.f32.mrf.mxu1 }
  0x92   :  { %210 = vtanh.f32 %v77_v6 }
  0x93   :  { %212 = vtanh.f32 %v80_v7 }
  0x98   :  { %v211_v9 = vpop.eup %210 }
  0x99   :  { %v89_v10 = vmul.f32 %v211_v9, %v209_v8  ;;  %v213_v11 = vpop.eup %212 }
  0x9a   :  { %v90_v13 = vmul.f32 %v213_v11, %v209_v8 }
  0x9b   :  { %v91_v12 = vsel %vm53_vm0, %v89_v10, 0.0 }
  0x9c   :  { %92 = vadd.xlane.f32.xlu0 %v91_v12  ;;  %v94_v14 = vsel %vm53_vm0, %v90_v13, 0.0 }
  0xa4   :  { %95 = vadd.xlane.f32.xlu0 %v94_v14 }
 0x10f   :  { %v93_v15 = vpop.xlane.xlu0 %92 }
 0x110   :  { %v97_v16 = vrot.slane %v93_v15, 4 }
 0x112   :  { %v98_v17 = vmax.f32 %v93_v15, %v97_v16 }
 0x114   :  { %v99_v18 = vrot.slane %v98_v17, 2 }
 0x116   :  { %v100_v19 = vmax.f32 %v98_v17, %v99_v18 }
 0x117   :  { %v96_v20 = vpop.xlane.xlu0 %95 }
 0x118   :  { %v101_v21 = vrot.slane %v100_v19, 1  ;;  %v103_v22 = vrot.slane %v96_v20, 4 }
 0x11a   :  { %v102_v23 = vmax.f32 %v100_v19, %v101_v21  ;;  %v104_v24 = vmax.f32 %v96_v20, %v103_v22 }
 0x11c   :  { %v109_v25 = vsub.f32 %v93_v15, %v102_v23  ;;  %v105_v26 = vrot.slane %v104_v24, 2 }
 0x11e   :  { %v111_v27 = vmul.f32 1.442695, %v109_v25  ;;  %v106_v28 = vmax.f32 %v104_v24, %v105_v26 }
 0x120   :  { %214 = vpow2.f32 %v111_v27  ;;  %v107_v29 = vrot.slane %v106_v28, 1 }
 0x122   :  { %v108_v30 = vmax.f32 %v106_v28, %v107_v29 }
 0x124   :  { %v110_v31 = vsub.f32 %v96_v20, %v108_v30 }
 0x126   :  { %v215_v32 = vpop.eup %214  ;;  %v113_v33 = vmul.f32 1.442695, %v110_v31 }
 0x127   :  { %v115_v34 = vrot.slane %v215_v32, 4 }
 0x128   :  { %216 = vpow2.f32 %v113_v33 }
 0x129   :  { %v116_v35 = vadd.f32 %v215_v32, %v115_v34 }
 0x12b   :  { %v117_v36 = vrot.slane %v116_v35, 2 }
 0x12d   :  { %v118_v37 = vadd.f32 %v117_v36, %v116_v35 }
 0x12e   :  { %v217_v38 = vpop.eup %216 }
 0x12f   :  { %v119_v39 = vrot.slane %v118_v37, 1  ;;  %v121_v40 = vrot.slane %v217_v38, 4 }
 0x131   :  { %v120_v41 = vadd.f32 %v119_v39, %v118_v37  ;;  %v122_v42 = vadd.f32 %v217_v38, %v121_v40 }
 0x133   :  { %218 = vrcp.f32 %v120_v41  ;;  %v123_v43 = vrot.slane %v122_v42, 2  ;;  %v138_v50 = vand.u32 2147483648, %v120_v41  ;;  %v136_v52 = vand.u32 2147483647, %v120_v41 }
 0x134   :  { %vm132_vm2 = vweird.f32 %v120_v41 }
 0x135   :  { %v124_v44 = vadd.f32 %v123_v43, %v122_v42  ;;  %v139_v55 = vor.u32 1.1754944e-38, %v138_v50  ;;  %vm137_vm4 = vcmp.eq.f32.partialorder %v136_v52, 8.507059e+37 }
 0x137   :  { %v125_v45 = vrot.slane %v124_v44, 1 }
 0x139   :  { %v219_v46 = vpop.eup %218  ;;  %v126_v47 = vadd.f32 %v125_v45, %v124_v44 }
 0x13a   :  { %v128_v48 = vmul.f32 %v219_v46, %v120_v41  ;;  %vm133_vm1 = vweird.f32 %v219_v46 }
 0x13b   :  { %220 = vrcp.f32 %v126_v47  ;;  %vm134_vm3 = vmor %vm132_vm2, %vm133_vm1  ;;  %v153_v61 = vand.u32 2147483648, %v126_v47  ;;  %v151_v63 = vand.u32 2147483647, %v126_v47  ;;  %vm147_vm6 = vweird.f32 %v126_v47 }
 0x13c   :  { %v129_v49 = vsub.f32 1.0, %v128_v48 }
 0x13d   :  { %v154_v3 = vor.u32 1.1754944e-38, %v153_v61  ;;  %vm152_vm8 = vcmp.eq.f32.partialorder %v151_v63, 8.507059e+37 }
 0x13e   :  { %v130_v51 = vmul.f32 %v219_v46, %v129_v49 }
 0x140   :  { %v131_v53 = vadd.f32 %v219_v46, %v130_v51 }
 0x141   :  { %v221_v54 = vpop.eup %220 }
 0x142   :  { %v143_v56 = vmul.f32 %v221_v54, %v126_v47  ;;  %v135_v57 = vsel %vm134_vm3, %v219_v46, %v131_v53  ;;  %vm148_vm5 = vweird.f32 %v221_v54 }
 0x143   :  { %v140_v58 = vsel %vm137_vm4, %v139_v55, %v135_v57  ;;  %vm149_vm7 = vmor %vm147_vm6, %vm148_vm5 }
 0x144   :  { %v144_v59 = vsub.f32 1.0, %v143_v56  ;;  %v141_v60 = vmul.f32 %v215_v32, %v140_v58 }
 0x146   :  { %v145_v62 = vmul.f32 %v221_v54, %v144_v59  ;;  %v157_v0 = vmul.f32 %v141_v60, %v331_v4 }
 0x148   :  { %v146_v1 = vadd.f32 %v221_v54, %v145_v62  ;;  %v159_v2 = vsel %vm53_vm0, %v157_v0, 0.0 }
 0x149   :  { %v160_v6 = vrot.slane %v159_v2, 4 }
 0x14a   :  { %v150_v7 = vsel %vm149_vm7, %v221_v54, %v146_v1 }
 0x14b   :  { %v155_v8 = vsel %vm152_vm8, %v154_v3, %v150_v7  ;;  %v161_v9 = vadd.f32 %v160_v6, %v159_v2 }
 0x14c   :  { %v156_v10 = vmul.f32 %v217_v38, %v155_v8 }
 0x14d   :  { %v162_v12 = vrot.slane %v161_v9, 2 }
 0x14e   :  { %v158_v11 = vmul.f32 %v156_v10, %v333_v5 }
 0x14f   :  { %v163_v15 = vadd.f32 %v162_v12, %v161_v9 }
 0x150   :  { %v166_v13 = vsel %vm53_vm0, %v158_v11, 0.0 }
 0x151   :  { %v167_v14 = vrot.slane %v166_v13, 4  ;;  %v164_v17 = vrot.slane %v163_v15, 1 }
 0x153   :  { %v168_v4 = vadd.f32 %v167_v14, %v166_v13  ;;  %v165_v20 = vadd.f32 %v164_v17, %v163_v15 }
 0x155   :  { %v169_v16 = vrot.slane %v168_v4, 2 }
 0x157   :  { %v170_v18 = vadd.f32 %v169_v16, %v168_v4 }
 0x159   :  { %v171_v19 = vrot.slane %v170_v18, 1 }
 0x15b   :  { %v172_v21 = vadd.f32 %v171_v19, %v170_v18 }
 0x15d   :  { %v176_v5 = vsel %vm175_vm9, %v172_v21, %v165_v20 }
 0x15e   :  { %179 = vst.msk [vmem:[#allocation7] sm:$0x3] %vm178_vm10, %v176_v5 }
 0x15f   :  { %190 = dma.vmem_to_hbm [thread:$0]  %s186_s24, 32, %s188_s27, [#allocation4]  }
 0x160   :  { %298 = dma.done.wait [#allocation4], 32  }
 0x161   :  { %299 = vsyncadd [#allocation4], 4294967264 }
 0x162   :  { %195 = vsyncpa [#allocation3], 1 }
 0x163   :  { %196 = vsyncpa [#allocation6], 1 }
 0x164   :  { %197 = vsyncpa [#allocation4], 1 }

</bundles_post_ra>
